<compile_context>
chip_gen: v6e
topology: v6e:2x2x1
jax: 0.10.0
libtpu: 0.0.40
codegen_flags: <defaults>
</compile_context>

<pallas_src>
import math
import functools

import jax
import jax.numpy as jnp
from jax import lax
from jax.experimental import pallas as pl
from jax.experimental.pallas import tpu as pltpu


# ------------------------------- Kernel ----------------------------------
def _pos_encoding_kernel(x_ref, o_ref, *, seq_tile, neg_log_base_over_d):
    """x_ref, o_ref: (seq_tile, d_model) VMEM tiles of one batch element."""
    st, d = o_ref.shape

    # Global sequence position of each row in this tile.
    s_off = pl.program_id(1) * seq_tile
    pos = (s_off + lax.broadcasted_iota(jnp.int32, (st, d), 0)).astype(jnp.float32)

    # Column index -> frequency.  PyTorch:
    #   div_term[i] = exp(2i * -(log(10000)/d_model)),  pe[:, 2i]   = sin(pos*div_term[i])
    #                                                   pe[:, 2i+1] = cos(pos*div_term[i])
    col = lax.broadcasted_iota(jnp.int32, (st, d), 1)
    is_odd = col & 1
    even_col = (col - is_odd).astype(jnp.float32)          # 2 * (col // 2)
    inv_freq = jnp.exp(even_col * neg_log_base_over_d)     # EUP
    angle = pos * inv_freq

    pe = jnp.where(is_odd == 0, jnp.sin(angle), jnp.cos(angle))
    o_ref[...] = (x_ref[...].astype(jnp.float32) + pe).astype(o_ref.dtype)


# ------------------------------- Wrapper ----------------------------------
def _pick_seq_tile(seq_len, d_model, itemsize):
    """Largest multiple-of-8 seq tile with ~<=2 MiB per buffer (or full seq)."""
    target_bytes = 2 << 20
    t = min(seq_len, max(8, target_bytes // max(1, d_model * itemsize)))
    if t >= seq_len:
        return seq_len                       # full dim always satisfies block rule
    return max(8, (t // 8) * 8)


def positional_encoding(x, *, max_len=5000):
    """x: (B, S, d_model) -> x + sinusoidal PE (dropout = identity, eval mode)."""
    B, S, D = x.shape
    assert S <= max_len, "sequence length exceeds max_len"
    assert D % 2 == 0, "d_model must be even (as in the PyTorch module)"

    seq_tile = _pick_seq_tile(S, D, jnp.dtype(x.dtype).itemsize)
    grid = (B, pl.cdiv(S, seq_tile))

    kernel = functools.partial(
        _pos_encoding_kernel,
        seq_tile=seq_tile,
        neg_log_base_over_d=-(math.log(10000.0) / D),
    )

    # Leading batch dim squeezed out of the kernel view (block_shape None).
    spec = pl.BlockSpec((None, seq_tile, D), lambda b, s: (b, s, 0))

    return pl.pallas_call(
        kernel,
        grid=grid,
        in_specs=[spec],
        out_specs=spec,
        out_shape=jax.ShapeDtypeStruct((B, S, D), x.dtype),
        compiler_params=pltpu.CompilerParams(
            dimension_semantics=("parallel", "parallel")
        ),
    )(x)


# --------------------------- Pure-JAX reference ---------------------------
def _reference(x):
    B, S, D = x.shape
    position = jnp.arange(S, dtype=jnp.float32)[:, None]
    div_term = jnp.exp(
        jnp.arange(0, D, 2, dtype=jnp.float32) * (-(math.log(10000.0) / D))
    )
    angles = position * div_term                       # (S, D//2)
    pe = jnp.zeros((S, D), jnp.float32)
    pe = pe.at[:, 0::2].set(jnp.sin(angles))
    pe = pe.at[:, 1::2].set(jnp.cos(angles))
    return (x.astype(jnp.float32) + pe[None]).astype(x.dtype)   # dropout = identity


# --------------------------------- Main -----------------------------------
if __name__ == "__main__":
    key = jax.random.PRNGKey(0)

    # Small shape implied by the module: batch=2, seq=8, d_model=32.
    B, S, D = 2, 8, 32
    x = jax.random.normal(key, (B, S, D), jnp.float32)

    out = jax.block_until_ready(positional_encoding(x))
    ref = _reference(x)
    assert out.shape == (B, S, D)
    assert jnp.allclose(out, ref, atol=1e-5, rtol=1e-5)

    # Second check exercising a multi-tile grid with lane-dense d_model.
    B2, S2, D2 = 2, 256, 128
    x2 = jax.random.normal(jax.random.PRNGKey(1), (B2, S2, D2), jnp.float32)
    out2 = jax.block_until_ready(positional_encoding(x2))
    assert jnp.allclose(out2, _reference(x2), atol=1e-5, rtol=1e-5)

    print("KERNEL_OK")
</pallas_src>

<mosaic_0001>
module attributes {stable_mosaic.version = 11 : i64} {
  func.func @_pos_encoding_kernel(%arg0: i32, %arg1: i32, %arg2: memref<1x8x32xf32, #tpu.memory_space<vmem>>, %arg3: memref<1x8x32xf32, #tpu.memory_space<vmem>>) attributes {dimension_semantics = [#tpu.dimension_semantics<parallel>, #tpu.dimension_semantics<parallel>], iteration_bounds = array<i64: 2, 1>, scalar_prefetch = 0 : i64, scratch_operands = 0 : i64, tpu.core_type = #tpu.core_type<tc>, window_params = [{transform_indices = @transform_0, window_bounds = array<i64: 1, 8, 32>}, {transform_indices = @transform_1, window_bounds = array<i64: 1, 8, 32>}]} {
    %c8_i32 = arith.constant 8 : i32
    %0 = arith.muli %arg1, %c8_i32 : i32
    %1 = tpu.iota {dimensions = array<i32: 0>} : vector<8x32xi32>
    %2 = vector.broadcast %0 : i32 to vector<8x32xi32>
    %3 = arith.addi %2, %1 : vector<8x32xi32>
    %4 = arith.sitofp %3 : vector<8x32xi32> to vector<8x32xf32>
    %5 = tpu.iota {dimensions = array<i32: 1>} : vector<8x32xi32>
    %c1_i32 = arith.constant 1 : i32
    %6 = vector.broadcast %c1_i32 : i32 to vector<8x32xi32>
    %7 = arith.andi %5, %6 : vector<8x32xi32>
    %8 = arith.subi %5, %7 : vector<8x32xi32>
    %9 = arith.sitofp %8 : vector<8x32xi32> to vector<8x32xf32>
    %cst = arith.constant -0.287823141 : f32
    %10 = vector.broadcast %cst : f32 to vector<8x32xf32>
    %11 = arith.mulf %9, %10 : vector<8x32xf32>
    %12 = math.exp %11 : vector<8x32xf32>
    %13 = arith.mulf %4, %12 : vector<8x32xf32>
    %c0_i32 = arith.constant 0 : i32
    %14 = vector.broadcast %c0_i32 : i32 to vector<8x32xi32>
    %15 = arith.cmpi eq, %7, %14 : vector<8x32xi32>
    %16 = math.sin %13 : vector<8x32xf32>
    %17 = math.cos %13 : vector<8x32xf32>
    %18 = arith.select %15, %16, %17 : vector<8x32xi1>, vector<8x32xf32>
    %c0 = arith.constant 0 : index
    %c0_0 = arith.constant 0 : index
    %c0_1 = arith.constant 0 : index
    %19 = vector.load %arg2[%c0, %c0_0, %c0_1] : memref<1x8x32xf32, #tpu.memory_space<vmem>>, vector<1x8x32xf32>
    %20 = vector.shape_cast %19 : vector<1x8x32xf32> to vector<8x32xf32>
    %21 = arith.addf %20, %18 : vector<8x32xf32>
    %c0_2 = arith.constant 0 : index
    %c0_3 = arith.constant 0 : index
    %c0_4 = arith.constant 0 : index
    %22 = vector.load %arg3[%c0_2, %c0_3, %c0_4] : memref<1x8x32xf32, #tpu.memory_space<vmem>>, vector<1x8x32xf32>
    %23 = vector.shape_cast %22 : vector<1x8x32xf32> to vector<8x32xf32>
    %24 = vector.shape_cast %21 : vector<8x32xf32> to vector<1x8x32xf32>
    tpu.vector_store %arg3[%c0_2, %c0_3, %c0_4], %24 {strides = array<i32>} : memref<1x8x32xf32, #tpu.memory_space<vmem>>, vector<1x8x32xf32>,
    return
  }
  func.func @transform_0(%arg0: i32, %arg1: i32) -> (i32, i32, i32) {
    %c0_i32 = arith.constant 0 : i32
    %c0_i32_0 = arith.constant 0 : i32
    return %arg0, %arg1, %c0_i32 : i32, i32, i32
  }
  func.func @transform_1(%arg0: i32, %arg1: i32) -> (i32, i32, i32) {
    %c0_i32 = arith.constant 0 : i32
    %c0_i32_0 = arith.constant 0 : i32
    return %arg0, %arg1, %c0_i32 : i32, i32, i32
  }
}

</mosaic_0001>

<bundles_post_ra>
// kernel: tpu_custom_call.1
= control target key start
LH: loop header
LB: loop body
LE: loop exit
PB: predicated region body
PF: predicated region fallthrough
CT: control target
= control target key end

     0   :  { %6 = vsyncpa [#allocation3], 0  ;;  %s875_s0 = inlined_call_operand.hbm [shape: f32[2,8,32], index: 0, kind: input, shape index: {}]   ;;  %s876_s1 = inlined_call_operand.hbm [shape: f32[2,8,32], index: 1, kind: output, shape index: {}]  }
   0x1   :  { %8 = vsyncpa [#allocation3 + $0x1], 0 }
   0x2   :  { %9 = vsyncpa [#allocation4], 0 }
   0x3   :  { %11 = vsyncpa [#allocation4 + $0x1], 0  ;;  %s699_s6 = smov 0   ;;  %s701_s7 = smov 0  }
   0x4   :  { %s703_s8 = smov 0   ;;  %s705_s9 = smov 0  }
   0x5   :  { %s707_s10 = smov 0   ;;  %s709_s11 = smov 0  }
   0x6 LB: > { %s472_s12 = sadd.s32 4294967295, %s679_s11   ;;  %s473_s13 = sadd.s32 4294967294, %s679_s11   ;;  %s679_s11 = sphi %s709_s11, %s17_s11   ;;  %s675_s10 = sphi %s707_s10, %s888_s10   ;;  %s671_s9 = sphi %s705_s9, %s887_s9   ;;  %s667_s8 = sphi %s703_s8, %s886_s8   ;;  %s663_s7 = sphi %s701_s7, %s885_s7   ;;  %s659_s6 = sphi %s699_s6, %s884_s6  }
   0x7   : > { %s29_s14 = sadd.s32 1, %s675_s10  ;;  %s38_s15 = sadd.s32 1, %s667_s8 }
   0x8   : > { %p31_p0 = scmp.ge.s32.totalorder %s29_s14, 2  ;;  %p45_p1 = scmp.ne.s32.totalorder %s667_s8, %s663_s7 }
   0x9   : > { %p46_p2 = scmp.eq.s32.totalorder %s679_s11, 0  ;;  %p51_p3 = scmp.ne.s32.totalorder %s663_s7, %s659_s6 }
   0xa   : > { %s890_s14 = smov (%p31_p0, %s29_s14), 0  ;;  %p52_p5 = scmp.eq.s32.totalorder %s472_s12, 0 }
   0xb   : > { %p740_p4 = por %p46_p2, %p45_p1  ;;  %s33_s17 = ssub.s32 %s675_s10, %s890_s14 }
   0xc   : > { %p77_p6 = scmp.eq.s32.totalorder %s472_s12, 1  ;;  %p36_p7 = scmp.eq.s32.totalorder %s33_s17, 0 }
   0xd   : > { %p746_p8 = por %p52_p5, %p51_p3  ;;  %p83_p10 = scmp.eq.s32.totalorder %s473_s13, 1 }
   0xe   : > { %p750_p9 = por %p77_p6, %p45_p1  ;;  %p509_p13 = scmp.lt.s32.totalorder %s679_s11, 2 }
   0xf   : > { %s755_s20 = scalar_select %p36_p7, %s667_s8, %s38_s15  }
  0x10   : > { %p757_p11 = por %p83_p10, %p51_p3  ;;  %s103_s22 = sand.u32 1, %s667_s8  }
  0x11   : > { %s476_s23 = sshll.u32 %s103_s22, 3  ;;  %s477_s24 = sshll.u32 %s675_s10, 7 }
  0x12   : > { %s880_s21 = scalar_select %p757_p11, 1, 0 }
  0x13   : > { %s113_s27 = scalar_lea.hbm %s875_s0, %s477_s24  ;;  %s107_s28 = scalar_lea.vmem [#allocation2], %s476_s23 }
  0x14   : > { %s115_s29 = sshll.u32 %s107_s28, 4  ;;  %p770_p0 = pnand %p509_p13, %p740_p4  ;;  %s116_s29 = int_to_ptr.vmem [resolvable:$true] %s115_s29 }
  0x15   : > { %p478_p1 = scmp.ge.s32.totalorder %s679_s11, 1  ;;  %p120_p2 = scmp.lt.s32.totalorder %s679_s11, 3 }
  0x16   : > { %s104_s2 = scalar_lea.sflag [#allocation3], %s103_s22  ;;  %p573_p3 = pneg %p770_p0 }
  0x17   : > { %s584_s3 = scalar_lea.vmem %s116_s29, 128  ;;  %s681_s4 = smov [#allocation2]  }
  0x18   : > { %p585_p5 = scmp.ne.s32.totalorder %s116_s29, %s584_s3  ;;  %s589_s5 = sshll.u32 %s681_s4, 4  ;;  %s590_s5 = int_to_ptr.vmem [resolvable:$false] %s589_s5 }
  0x19   : > { %s591_s12 = scalar_lea.vmem %s590_s5, 256  ;;  %p592_p10 = scmp.lt.s32.totalorder %s116_s29, %s590_s5 }
  0x1a   : > { %p587_p6 = pnand %p585_p5, %p573_p3  ;;  %p593_p12 = scmp.lt.s32.totalorder %s591_s12, %s584_s3 }
  0x1c   : > { %p588_p7 = pneg %p587_p6  ;;  %p594_p4 = por %p593_p12, %p592_p10 }
  0x1e   : > { %p595_p13 = pnand %p594_p4, %p588_p7 }
  0x20   : > { %598 = shalt.err (!%p595_p13)
}
  0x21   : > { %504 = dma.hbm_to_vmem [thread:$0]  (!%p770_p0), %s113_s27, 128, %s116_s29, %s104_s2  }
  0x22   : > { %p121_p11 = pnand %p478_p1, %p120_p2 }
  0x23   : > { %s785_s13 = sand.u32 (!%p121_p11), 1, %s663_s7  }
  0x24   : > { %124 = sbr.rel (%p121_p11) target bundleno = 171 (0xab), region = 24  ;;  %s479_s15 = sshll.u32 (!%p121_p11), %s785_s13, 3 }
  0x25   : > { %s127_s16 = scalar_lea.sflag (!%p121_p11), [#allocation3], %s785_s13  ;;  %s791_s17 = scalar_lea.vmem (!%p121_p11), [#allocation2], %s479_s15 }
  0x29   : > { %650 = dma.done.wait (%p746_p8), %s127_s16, 128  }
  0x2a   : > { %652 = vsyncadd (%p746_p8), %s127_s16, 4294967168  ;;  %v150_v0 = vlaneseq  ;;  %v682_v22 = vmov 683565275   ;;  %v683_v24 = vmov 2475754826   ;;  %s148_s18 = scalar_lea.vmem [#allocation5], %s479_s15 }
  0x2b   : > { %v684_v26 = vmov 2131351028   ;;  %v685_v28 = vmov 2102212464   ;;  %v686_v30 = vmov 920167782  }
  0x2c   : > { %v797_v1 = vand.u32 127, %v150_v0  ;;  %v151_v7 = vshrl.u32 %v150_v0, 7  ;;  %v687_v37 = vmov 1326507024   ;;  %s392_s22 = sshll.u32 %s148_s18, 4  ;;  %s490_s23 = sshll.u32 %s671_s9, 7  ;;  %s830_s22 = int_to_ptr.vmem [resolvable:$true] %s392_s22 }
  0x2d   : > { %s390_s26 = scalar_lea.hbm %s876_s1, %s490_s23  ;;  %s378_s27 = scalar_lea.sflag [#allocation4], %s785_s13 }
  0x2e   : > { %v157_v2 = vand.u32 1, %v797_v1  ;;  %v154_v8 = vcvt.s32.f32 %v151_v7  ;;  %s599_s28 = scalar_lea.vmem %s830_s22, 128  ;;  %s688_s9 = smov [#allocation5]  }
  0x2f   : > { %p600_p8 = scmp.ne.s32.totalorder %s830_s22, %s599_s28  ;;  %s603_s29 = sshll.u32 %s688_s9, 4  ;;  %s604_s29 = int_to_ptr.vmem [resolvable:$false] %s603_s29 }
  0x30   : > { %v158_v3 = vsub.s32 %v797_v1, %v157_v2  ;;  %s605_s30 = scalar_lea.vmem %s604_s29, 256  ;;  %p606_p0 = scmp.lt.s32.totalorder %s830_s22, %s604_s29 }
  0x31   : > { %p601_p11 = pnand %p600_p8, %p750_p9  ;;  %p607_p1 = scmp.lt.s32.totalorder %s605_s30, %s599_s28 }
  0x32   : > { %v159_v4 = vcvt.s32.f32 %v158_v3 }
  0x33   : > { %p602_p12 = pneg %p601_p11  ;;  %p608_p2 = por %p607_p1, %p606_p0 }
  0x34   : > { %v160_v5 = vmul.f32 -0.28782314, %v159_v4 }
  0x35   : > { %p609_p3 = pnand %p608_p2, %p602_p12 }
  0x36   : > { %v161_v6 = vmul.f32 1.442695, %v160_v5 }
  0x38   : > { %565 = vpow2.f32 %v161_v6 }
  0x45   : > { %v566_v9 = vpop.eup %565 }
  0x46   : > { %v803_v10 = vmul.f32 %v566_v9, %v154_v8 }
  0x48   : > { %v168_v11 = vand.u32 2139095040, %v803_v10  ;;  %v165_v13 = vand.u32 2147483647, %v803_v10  ;;  %vm167_vm7 = vcmp.lt.s32.totalorder %v803_v10, 0  ;;  %vm257_vm15 = vweird.f32 %v803_v10 }
  0x4a   : > { %v169_v12 = vshrl.u32 %v168_v11, 23  ;;  %v172_v16 = vand.u32 8388607, %v165_v13  ;;  %vm166_vm8 = vcmp.le.f32.partialorder %v165_v13, 0.7853982 }
  0x4c   : > { %v481_v14 = vadd.s32 4294967169, %v169_v12  ;;  %v173_v19 = vor.u32 8388608, %v172_v16 }
  0x4e   : > { %v175_v15 = vadd.s32 1, %v481_v14  ;;  %v213_v39 = vshll.u32 %v173_v19, 8 }
  0x50   : > { %vm176_vm0 = vcmp.gt.s32.totalorder %v175_v15, 0 }
  0x51   : > { %v177_v17 = vsel %vm176_vm0, %v175_v15, 0  ;;  %vm164_vm0 = vcmp.eq.s32.totalorder %v157_v2, 0 }
  0x52   : > { %v179_v18 = vand.u32 31, %v177_v17  ;;  %v178_v20 = vshrl.u32 %v177_v17, 5 }
  0x54   : > { %v180_v21 = vsub.s32 32, %v179_v18  ;;  %v182_v23 = vshll.u32 %v682_v22, %v179_v18  ;;  %v185_v25 = vshll.u32 %v683_v24, %v179_v18  ;;  %v188_v27 = vshll.u32 %v684_v26, %v179_v18 }
  0x55   : > { %v191_v29 = vshll.u32 %v685_v28, %v179_v18  ;;  %v194_v31 = vshll.u32 %v686_v30, %v179_v18  ;;  %vm197_vm1 = vcmp.lt.s32.totalorder %v178_v20, 1  ;;  %vm200_vm2 = vcmp.lt.s32.totalorder %v178_v20, 4 }
  0x56   : > { %v181_v32 = vshrl.u32 %v682_v22, %v180_v21  ;;  %v183_v33 = vshrl.u32 %v683_v24, %v180_v21  ;;  %v186_v34 = vshrl.u32 %v684_v26, %v180_v21  ;;  %v189_v35 = vshrl.u32 %v685_v28, %v180_v21 }
  0x57   : > { %v192_v36 = vshrl.u32 %v686_v30, %v180_v21  ;;  %v195_v38 = vshrl.u32 %v687_v37, %v180_v21  ;;  %vm198_vm3 = vcmp.lt.s32.totalorder %v178_v20, 2  ;;  %vm199_vm4 = vcmp.lt.s32.totalorder %v178_v20, 3 }
  0x58   : > { %v184_v40 = vor.u32 %v183_v33, %v182_v23  ;;  %v187_v41 = vor.u32 %v186_v34, %v185_v25  ;;  %v190_v42 = vor.u32 %v189_v35, %v188_v27 }
  0x59   : > { %v193_v43 = vor.u32 %v192_v36, %v191_v29  ;;  %v196_v44 = vor.u32 %v195_v38, %v194_v31 }
  0x5a   : > { %v201_v45 = vsel %vm197_vm1, %v181_v32, %v184_v40  ;;  %v202_v46 = vsel %vm200_vm2, %v190_v42, 2102212464  ;;  %v205_v47 = vsel %vm197_vm1, %v184_v40, %v187_v41  ;;  %v209_v48 = vsel %vm197_vm1, %v187_v41, %v190_v42 }
  0x5b   : > { %v203_v49 = vsel %vm199_vm4, %v187_v41, %v202_v46  ;;  %v206_v50 = vsel %vm200_vm2, %v193_v43, 920167782  ;;  %v210_v51 = vsel %vm200_vm2, %v196_v44, 1326507024  ;;  %v373_v44 = vld [vmem:[%s791_s17] sm:$0xff]  ;;  %vm375_vm1 = vcmask 261120  }
  0x5c   : > { %v207_v52 = vsel %vm199_vm4, %v190_v42, %v206_v50  ;;  %v211_v53 = vsel %vm199_vm4, %v193_v43, %v210_v51  ;;  %v204_v54 = vsel %vm198_vm3, %v201_v45, %v203_v49 }
  0x5d   : > { %v208_v55 = vsel %vm198_vm3, %v205_v47, %v207_v52  ;;  %v212_v56 = vsel %vm198_vm3, %v209_v48, %v211_v53  ;;  %v220_v61 = vmul.u32 %v213_v39, %v204_v54 }
  0x5e   : > { %v809_v57 = vmul.u32.u64.low %v213_v39, %v212_v56  ;;  %v810_v58 = vmul.u32.u64.high %v213_v39, %v212_v56, %v809_v57  ;;  %v812_v59 = vmul.u32.u64.low %v213_v39, %v208_v55  ;;  %v813_v60 = vmul.u32.u64.high %v213_v39, %v208_v55, %v812_v59 }
  0x60   : > { %vm222_vm5 = vc.u32 %v810_v58, %v812_v59  ;;  %v223_v62 = vadd.s32 1, %v813_v60  ;;  %v221_v12 = vadd.s32 %v812_v59, %v810_v58 }
  0x62   : > { %v224_v63 = vsel %vm222_vm5, %v223_v62, %v813_v60 }
  0x63   : > { %v225_v0 = vadd.s32 %v224_v63, %v220_v61 }
  0x65   : > { %v226_v3 = vadd.s32 536870912, %v225_v0 }
  0x67   : > { %v227_v4 = vshrl.u32 %v226_v3, 30 }
  0x69   : > { %v228_v5 = vshll.u32 %v227_v4, 30  ;;  %v251_v26 = vsub.s32 4, %v227_v4 }
  0x6b   : > { %v229_v6 = vsub.s32 %v225_v0, %v228_v5  ;;  %v252_v29 = vsel %vm167_vm7, %v251_v26, %v227_v4 }
  0x6c   : > { %v254_v31 = vsel %vm166_vm8, 0, %v252_v29 }
  0x6d   : > { %v231_v7 = vsub.s32 0, %v229_v6  ;;  %v258_v32 = vadd.s32 3, %v254_v31  ;;  %v362_v34 = vand.u32 3, %v254_v31 }
  0x6f   : > { %v482_v8 = vmin.u32 %v231_v7, %v229_v6  ;;  %v259_v33 = vand.u32 3, %v258_v32  ;;  %vm367_vm10 = vcmp.eq.s32.totalorder %v362_v34, 2  ;;  %vm364_vm12 = vcmp.eq.s32.totalorder %v362_v34, 0 }
  0x70   : > { %vm363_vm14 = vcmp.lt.s32.totalorder %v362_v34, 2 }
  0x71   : > { %v233_v9 = vclz %v482_v8  ;;  %vm264_vm9 = vcmp.eq.s32.totalorder %v259_v33, 2  ;;  %vm261_vm11 = vcmp.eq.s32.totalorder %v259_v33, 0  ;;  %vm260_vm13 = vcmp.lt.s32.totalorder %v259_v33, 2 }
  0x73   : > { %v483_v11 = vadd.s32 4294967294, %v233_v9 }
  0x75   : > { %vm484_vm6 = vcmp.lt.s32.totalorder %v483_v11, 0 }
  0x76   : > { %v236_v14 = vsel %vm484_vm6, 0, %v483_v11 }
  0x77   : > { %v237_v15 = vsub.s32 32, %v236_v14  ;;  %v238_v16 = vshll.u32 %v229_v6, %v236_v14  ;;  %v241_v17 = vsub.s32 4294967266, %v236_v14 }
  0x79   : > { %v239_v18 = vshrl.u32 %v221_v12, %v237_v15  ;;  %v242_v19 = vadd.s32 127, %v241_v17 }
  0x7b   : > { %v240_v20 = vor.u32 %v239_v18, %v238_v16  ;;  %v243_v21 = vshll.u32 %v242_v19, 23 }
  0x7d   : > { %v244_v22 = vor.u32 4788187, %v243_v21  ;;  %v247_v23 = vcvt.s32.f32 %v240_v20 }
  0x7f   : > { %v245_v24 = vand.u32 2147483647, %v244_v22 }
  0x81   : > { %v248_v25 = vmul.f32 %v247_v23, %v245_v24 }
  0x83   : > { %v249_v27 = vxor.u32 2147483648, %v248_v25 }
  0x85   : > { %v250_v28 = vsel %vm167_vm7, %v249_v27, %v248_v25 }
  0x86   : > { %v253_v30 = vsel %vm166_vm8, %v803_v10, %v250_v28 }
  0x87   : > { %567 = vcosq.f32 %v253_v30 }
  0x88   : > { %569 = vsinq.f32 %v253_v30 }
  0x94   : > { %v568_v35 = vpop.eup %567 }
  0x95   : > { %v570_v36 = vpop.eup %569  ;;  %v265_v37 = vxor.u32 2147483648, %v568_v35 }
  0x96   : > { %v262_v13 = vxor.u32 2147483648, %v570_v36 }
  0x97   : > { %v266_v38 = vsel %vm264_vm9, %v265_v37, %v570_v36  ;;  %v369_v39 = vsel %vm367_vm10, %v265_v37, %v570_v36 }
  0x98   : > { %v263_v40 = vsel %vm261_vm11, %v568_v35, %v262_v13  ;;  %v366_v41 = vsel %vm364_vm12, %v568_v35, %v262_v13 }
  0x99   : > { %v267_v42 = vsel %vm260_vm13, %v263_v40, %v266_v38  ;;  %v370_v43 = vsel %vm363_vm14, %v366_v41, %v369_v39 }
  0x9a   : > { %v268_v45 = vsel %vm257_vm15, nan, %v267_v42  ;;  %v371_v46 = vsel %vm257_vm15, nan, %v370_v43 }
  0x9b   : > { %v372_v47 = vsel %vm164_vm0, %v268_v45, %v371_v46 }
  0x9c   : > { %v374_v1 = vadd.f32 %v373_v44, %v372_v47 }
  0x9e   : > { %376 = vst.msk [vmem:[%s148_s18] sm:$0xff] %vm375_vm1, %v374_v1 }
  0x9f   : > { %612 = shalt.err (!%p609_p3)
}
  0xa0   : > { %s613_s2 = scalar_lea.hbm %s390_s26, 128  ;;  %s617_s5 = scalar_lea.hbm %s876_s1, 256 }
  0xa1   : > { %p614_p5 = scmp.ne.s32.totalorder %s390_s26, %s613_s2  ;;  %p618_p10 = scmp.lt.s32.totalorder %s390_s26, %s876_s1 }
  0xa2   : > { %p619_p4 = scmp.lt.s32.totalorder %s617_s5, %s613_s2 }
  0xa3   : > { %p615_p6 = pnand %p614_p5, %p750_p9 }
  0xa4   : > { %p620_p13 = por %p619_p4, %p618_p10 }
  0xa5   : > { %p616_p7 = pneg %p615_p6 }
  0xa7   : > { %p621_p8 = pnand %p620_p13, %p616_p7 }
  0xa9   : > { %624 = shalt.err (!%p621_p8)
}
  0xaa   : > { %499 = dma.vmem_to_hbm [thread:$0]  (%p750_p9), %s830_s22, 128, %s390_s26, %s378_s27  }
  0xab PF: > { %s404_s15 = sand.u32 1, %s659_s6   ;;  %p882_p11 = scmp.ne.s32.totalorder %s880_s21, 0 }
  0xac   : > { %p883_p12 = scmp.ge.s32.totalorder %s679_s11, 2  ;;  %s405_s16 = scalar_lea.sflag [#allocation4], %s404_s15 }
  0xae   : > { %p506_p0 = pnand %p883_p12, %p882_p11 }
  0xb0   : > { %p507_p1 = pneg %p506_p0 }
  0xb2   : > { %654 = dma.done.wait (%p507_p1), %s405_s16, 128  }
  0xb3   : > { %656 = vsyncadd (%p507_p1), %s405_s16, 4294967168  ;;  %s17_s11 = sadd.s32 1, %s679_s11   ;;  %s884_s6 = smov %s663_s7 }
  0xb4   : > { %p14_p2 = scmp.ge.s32.totalorder %s17_s11, 4   ;;  %s885_s7 = smov %s667_s8 }
  0xb5   : > { %s886_s8 = smov %s755_s20  ;;  %s887_s9 = smov %s675_s10 }
  0xb6   : > { %s888_s10 = smov %s890_s14  ;;  %16 = sbr.rel (!%p14_p2) target bundleno = 6 (0x6), region = 69 }
  0xbb   :  { %410 = vsyncpa [#allocation3], 1 }
  0xbc   :  { %412 = vsyncpa [#allocation3 + $0x1], 1 }
  0xbd   :  { %413 = vsyncpa [#allocation4], 1 }
  0xbe   :  { %415 = vsyncpa [#allocation4 + $0x1], 1 }

</bundles_post_ra>
